<compile_context>
chip_gen: v6e
topology: v6e:2x2x1
jax: 0.10.0
libtpu: 0.0.40
codegen_flags: <defaults>
</compile_context>

<pallas_src>
import jax
import jax.numpy as jnp
from jax.experimental import pallas as pl
from jax.experimental.pallas import tpu as pltpu


LAYER_DIMS = [(7, 128), (128, 64), (64, 32), (32, 4)]  # (in_features, out_features)


def mlp_kernel(x_ref,
               w1_ref, b1_ref,
               w2_ref, b2_ref,
               w3_ref, b3_ref,
               w4_ref, b4_ref,
               o_ref):
    """Fused 4-layer MLP on one batch tile; batch on the lane (last) axis.

    x_ref : (7, TILE_B)   features on sublanes, batch on lanes (lane-dense)
    wN    : (out, in)     PyTorch nn.Linear layout, so each layer is W @ h
    bN    : (out, 1)      broadcasts over the lane (batch) axis
    o_ref : (4, TILE_B)

    All matmuls hit the MXU with f32 accumulation; bias-add / ReLU run on the
    VPU.  Dropout is identity at inference time.
    """
    x = x_ref[...]

    h1 = jnp.maximum(
        jnp.dot(w1_ref[...], x, preferred_element_type=jnp.float32) + b1_ref[...],
        0.0)
    # dropout(p=0.4): identity in eval mode
    h2 = jnp.maximum(
        jnp.dot(w2_ref[...], h1, preferred_element_type=jnp.float32) + b2_ref[...],
        0.0)
    # dropout(p=0.4): identity in eval mode
    h3 = jnp.maximum(
        jnp.dot(w3_ref[...], h2, preferred_element_type=jnp.float32) + b3_ref[...],
        0.0)
    o_ref[...] = (jnp.dot(w4_ref[...], h3, preferred_element_type=jnp.float32)
                  + b4_ref[...]).astype(o_ref.dtype)


def improved_classifier_forward(x, params, tile_b=2048):
    """x: (B, 7) float32.  params: dict of (out,in) weights and (out,1) biases."""
    B, F = x.shape
    assert F == 7, F

    # Batch-on-lanes tiling: tile must be a multiple of 128 lanes; don't make
    # it bigger than the (lane-rounded) batch itself.
    b_round = ((B + 127) // 128) * 128
    tile_b = ((max(tile_b, 128) + 127) // 128) * 128
    tile_b = min(tile_b, b_round)
    n_tiles = pl.cdiv(B, tile_b)
    b_pad = n_tiles * tile_b

    # One transpose + zero-pad in the JAX wrapper -> lane-dense kernel I/O.
    x_t = jnp.pad(x.T, ((0, 0), (0, b_pad - B)))          # (7, b_pad)

    w1, b1 = params["w1"], params["b1"]
    w2, b2 = params["w2"], params["b2"]
    w3, b3 = params["w3"], params["b3"]
    w4, b4 = params["w4"], params["b4"]

    # Advisory cost estimate for XLA's scheduler.
    flops_per_row = 2 * sum(fin * fout for fin, fout in LAYER_DIMS)
    weight_bytes = 4 * sum(fin * fout + fout for fin, fout in LAYER_DIMS)
    cost = pl.CostEstimate(
        flops=flops_per_row * b_pad,
        transcendentals=0,
        bytes_accessed=4 * (8 * b_pad + 8 * b_pad) + weight_bytes)

    # Weights / biases: full block, constant index_map -> DMA'd once, resident.
    def wspec(a):
        return pl.BlockSpec(a.shape, lambda i: (0, 0))

    out_t = pl.pallas_call(
        mlp_kernel,
        out_shape=jax.ShapeDtypeStruct((4, b_pad), jnp.float32),
        grid=(n_tiles,),
        in_specs=[pl.BlockSpec((7, tile_b), lambda i: (0, i)),
                  wspec(w1), wspec(b1),
                  wspec(w2), wspec(b2),
                  wspec(w3), wspec(b3),
                  wspec(w4), wspec(b4)],
        out_specs=pl.BlockSpec((4, tile_b), lambda i: (0, i)),
        compiler_params=pltpu.CompilerParams(
            dimension_semantics=("parallel",)),
        cost_estimate=cost,
    )(x_t, w1, b1, w2, b2, w3, b3, w4, b4)

    return out_t[:, :B].T                                  # (B, 4)


def init_params(key):
    """nn.Linear default init: U(-1/sqrt(fan_in), 1/sqrt(fan_in)), (out,in) layout."""
    params = {}
    keys = jax.random.split(key, 2 * len(LAYER_DIMS))
    for i, (fin, fout) in enumerate(LAYER_DIMS):
        bound = 1.0 / jnp.sqrt(jnp.float32(fin))
        params[f"w{i+1}"] = jax.random.uniform(
            keys[2 * i], (fout, fin), jnp.float32, -bound, bound)
        params[f"b{i+1}"] = jax.random.uniform(
            keys[2 * i + 1], (fout, 1), jnp.float32, -bound, bound)
    return params


def reference_forward(x, params):
    h = jnp.maximum(x @ params["w1"].T + params["b1"].T, 0.0)
    h = jnp.maximum(h @ params["w2"].T + params["b2"].T, 0.0)
    h = jnp.maximum(h @ params["w3"].T + params["b3"].T, 0.0)
    return h @ params["w4"].T + params["b4"].T


if __name__ == "__main__":
    key = jax.random.PRNGKey(0)
    pkey, xkey = jax.random.split(key)
    params = init_params(pkey)

    B = 8
    x = jax.random.normal(xkey, (B, 7), jnp.float32)

    out = improved_classifier_forward(x, params)
    out = jax.block_until_ready(out)

    ref = reference_forward(x, params)
    assert out.shape == (B, 4), out.shape
    assert jnp.allclose(out, ref, atol=1e-4, rtol=1e-4), "mismatch vs reference"

    print("KERNEL_OK")
</pallas_src>

<mosaic_0001>
module attributes {stable_mosaic.version = 11 : i64} {
  func.func @mlp_kernel(%arg0: i32, %arg1: memref<7x128xf32, #tpu.memory_space<vmem>>, %arg2: memref<128x7xf32, #tpu.memory_space<vmem>>, %arg3: memref<128x1xf32, #tpu.memory_space<vmem>>, %arg4: memref<64x128xf32, #tpu.memory_space<vmem>>, %arg5: memref<64x1xf32, #tpu.memory_space<vmem>>, %arg6: memref<32x64xf32, #tpu.memory_space<vmem>>, %arg7: memref<32x1xf32, #tpu.memory_space<vmem>>, %arg8: memref<4x32xf32, #tpu.memory_space<vmem>>, %arg9: memref<4x1xf32, #tpu.memory_space<vmem>>, %arg10: memref<4x128xf32, #tpu.memory_space<vmem>>) attributes {dimension_semantics = [#tpu.dimension_semantics<parallel>], iteration_bounds = array<i64: 1>, scalar_prefetch = 0 : i64, scratch_operands = 0 : i64, tpu.core_type = #tpu.core_type<tc>, window_params = [{transform_indices = @transform_0, window_bounds = array<i64: 7, 128>}, {pipeline_mode = #tpu.pipeline_mode<synchronous>, transform_indices = @transform_1, window_bounds = array<i64: 128, 7>}, {pipeline_mode = #tpu.pipeline_mode<synchronous>, transform_indices = @transform_2, window_bounds = array<i64: 128, 1>}, {pipeline_mode = #tpu.pipeline_mode<synchronous>, transform_indices = @transform_3, window_bounds = array<i64: 64, 128>}, {pipeline_mode = #tpu.pipeline_mode<synchronous>, transform_indices = @transform_4, window_bounds = array<i64: 64, 1>}, {pipeline_mode = #tpu.pipeline_mode<synchronous>, transform_indices = @transform_5, window_bounds = array<i64: 32, 64>}, {pipeline_mode = #tpu.pipeline_mode<synchronous>, transform_indices = @transform_6, window_bounds = array<i64: 32, 1>}, {pipeline_mode = #tpu.pipeline_mode<synchronous>, transform_indices = @transform_7, window_bounds = array<i64: 4, 32>}, {pipeline_mode = #tpu.pipeline_mode<synchronous>, transform_indices = @transform_8, window_bounds = array<i64: 4, 1>}, {transform_indices = @transform_9, window_bounds = array<i64: 4, 128>}]} {
    %c0 = arith.constant 0 : index
    %c0_0 = arith.constant 0 : index
    %0 = vector.load %arg1[%c0, %c0_0] : memref<7x128xf32, #tpu.memory_space<vmem>>, vector<7x128xf32>
    %c0_1 = arith.constant 0 : index
    %c0_2 = arith.constant 0 : index
    %1 = vector.load %arg2[%c0_1, %c0_2] : memref<128x7xf32, #tpu.memory_space<vmem>>, vector<128x7xf32>
    %cst = arith.constant dense<0.000000e+00> : vector<128x128xf32>
    %2 = tpu.matmul %1, %0, %cst {dimension_numbers = #tpu.dot_dimension_numbers<[1], [0], [0], [1], [0, 0, 1, 1], [], []>} : vector<128x7xf32>, vector<7x128xf32>, vector<128x128xf32> -> vector<128x128xf32>
    %c0_3 = arith.constant 0 : index
    %c0_4 = arith.constant 0 : index
    %3 = vector.load %arg3[%c0_3, %c0_4] : memref<128x1xf32, #tpu.memory_space<vmem>>, vector<128x1xf32>
    %4 = vector.broadcast %3 : vector<128x1xf32> to vector<128x128xf32>
    %5 = arith.addf %2, %4 : vector<128x128xf32>
    %cst_5 = arith.constant 0.000000e+00 : f32
    %6 = vector.broadcast %cst_5 : f32 to vector<128x128xf32>
    %7 = arith.maximumf %5, %6 : vector<128x128xf32>
    %c0_6 = arith.constant 0 : index
    %c0_7 = arith.constant 0 : index
    %8 = vector.load %arg4[%c0_6, %c0_7] : memref<64x128xf32, #tpu.memory_space<vmem>>, vector<64x128xf32>
    %cst_8 = arith.constant dense<0.000000e+00> : vector<64x128xf32>
    %9 = tpu.matmul %8, %7, %cst_8 {dimension_numbers = #tpu.dot_dimension_numbers<[1], [0], [0], [1], [0, 0, 1, 1], [], []>} : vector<64x128xf32>, vector<128x128xf32>, vector<64x128xf32> -> vector<64x128xf32>
    %c0_9 = arith.constant 0 : index
    %c0_10 = arith.constant 0 : index
    %10 = vector.load %arg5[%c0_9, %c0_10] : memref<64x1xf32, #tpu.memory_space<vmem>>, vector<64x1xf32>
    %11 = vector.broadcast %10 : vector<64x1xf32> to vector<64x128xf32>
    %12 = arith.addf %9, %11 : vector<64x128xf32>
    %cst_11 = arith.constant 0.000000e+00 : f32
    %13 = vector.broadcast %cst_11 : f32 to vector<64x128xf32>
    %14 = arith.maximumf %12, %13 : vector<64x128xf32>
    %c0_12 = arith.constant 0 : index
    %c0_13 = arith.constant 0 : index
    %15 = vector.load %arg6[%c0_12, %c0_13] : memref<32x64xf32, #tpu.memory_space<vmem>>, vector<32x64xf32>
    %cst_14 = arith.constant dense<0.000000e+00> : vector<32x128xf32>
    %16 = tpu.matmul %15, %14, %cst_14 {dimension_numbers = #tpu.dot_dimension_numbers<[1], [0], [0], [1], [0, 0, 1, 1], [], []>} : vector<32x64xf32>, vector<64x128xf32>, vector<32x128xf32> -> vector<32x128xf32>
    %c0_15 = arith.constant 0 : index
    %c0_16 = arith.constant 0 : index
    %17 = vector.load %arg7[%c0_15, %c0_16] : memref<32x1xf32, #tpu.memory_space<vmem>>, vector<32x1xf32>
    %18 = vector.broadcast %17 : vector<32x1xf32> to vector<32x128xf32>
    %19 = arith.addf %16, %18 : vector<32x128xf32>
    %cst_17 = arith.constant 0.000000e+00 : f32
    %20 = vector.broadcast %cst_17 : f32 to vector<32x128xf32>
    %21 = arith.maximumf %19, %20 : vector<32x128xf32>
    %c0_18 = arith.constant 0 : index
    %c0_19 = arith.constant 0 : index
    %22 = vector.load %arg8[%c0_18, %c0_19] : memref<4x32xf32, #tpu.memory_space<vmem>>, vector<4x32xf32>
    %cst_20 = arith.constant dense<0.000000e+00> : vector<4x128xf32>
    %23 = tpu.matmul %22, %21, %cst_20 {dimension_numbers = #tpu.dot_dimension_numbers<[1], [0], [0], [1], [0, 0, 1, 1], [], []>} : vector<4x32xf32>, vector<32x128xf32>, vector<4x128xf32> -> vector<4x128xf32>
    %c0_21 = arith.constant 0 : index
    %c0_22 = arith.constant 0 : index
    %24 = vector.load %arg9[%c0_21, %c0_22] : memref<4x1xf32, #tpu.memory_space<vmem>>, vector<4x1xf32>
    %25 = vector.broadcast %24 : vector<4x1xf32> to vector<4x128xf32>
    %26 = arith.addf %23, %25 : vector<4x128xf32>
    %c0_23 = arith.constant 0 : index
    %c0_24 = arith.constant 0 : index
    %27 = vector.load %arg10[%c0_23, %c0_24] : memref<4x128xf32, #tpu.memory_space<vmem>>, vector<4x128xf32>
    tpu.vector_store %arg10[%c0_23, %c0_24], %26 {strides = array<i32>} : memref<4x128xf32, #tpu.memory_space<vmem>>, vector<4x128xf32>,
    return
  }
  func.func @transform_0(%arg0: i32) -> (i32, i32) {
    %c0_i32 = arith.constant 0 : i32
    %c0_i32_0 = arith.constant 0 : i32
    return %c0_i32, %arg0 : i32, i32
  }
  func.func @transform_1(%arg0: i32) -> (i32, i32) {
    %c0_i32 = arith.constant 0 : i32
    %c0_i32_0 = arith.constant 0 : i32
    %c0_i32_1 = arith.constant 0 : i32
    return %c0_i32, %c0_i32_0 : i32, i32
  }
  func.func @transform_2(%arg0: i32) -> (i32, i32) {
    %c0_i32 = arith.constant 0 : i32
    %c0_i32_0 = arith.constant 0 : i32
    %c0_i32_1 = arith.constant 0 : i32
    return %c0_i32, %c0_i32_0 : i32, i32
  }
  func.func @transform_3(%arg0: i32) -> (i32, i32) {
    %c0_i32 = arith.constant 0 : i32
    %c0_i32_0 = arith.constant 0 : i32
    %c0_i32_1 = arith.constant 0 : i32
    return %c0_i32, %c0_i32_0 : i32, i32
  }
  func.func @transform_4(%arg0: i32) -> (i32, i32) {
    %c0_i32 = arith.constant 0 : i32
    %c0_i32_0 = arith.constant 0 : i32
    %c0_i32_1 = arith.constant 0 : i32
    return %c0_i32, %c0_i32_0 : i32, i32
  }
  func.func @transform_5(%arg0: i32) -> (i32, i32) {
    %c0_i32 = arith.constant 0 : i32
    %c0_i32_0 = arith.constant 0 : i32
    %c0_i32_1 = arith.constant 0 : i32
    return %c0_i32, %c0_i32_0 : i32, i32
  }
  func.func @transform_6(%arg0: i32) -> (i32, i32) {
    %c0_i32 = arith.constant 0 : i32
    %c0_i32_0 = arith.constant 0 : i32
    %c0_i32_1 = arith.constant 0 : i32
    return %c0_i32, %c0_i32_0 : i32, i32
  }
  func.func @transform_7(%arg0: i32) -> (i32, i32) {
    %c0_i32 = arith.constant 0 : i32
    %c0_i32_0 = arith.constant 0 : i32
    %c0_i32_1 = arith.constant 0 : i32
    return %c0_i32, %c0_i32_0 : i32, i32
  }
  func.func @transform_8(%arg0: i32) -> (i32, i32) {
    %c0_i32 = arith.constant 0 : i32
    %c0_i32_0 = arith.constant 0 : i32
    %c0_i32_1 = arith.constant 0 : i32
    return %c0_i32, %c0_i32_0 : i32, i32
  }
  func.func @transform_9(%arg0: i32) -> (i32, i32) {
    %c0_i32 = arith.constant 0 : i32
    %c0_i32_0 = arith.constant 0 : i32
    return %c0_i32, %arg0 : i32, i32
  }
}

</mosaic_0001>

<bundles_post_ra>
// kernel: tpu_custom_call.1
= control target key start
LH: loop header
LB: loop body
LE: loop exit
PB: predicated region body
PF: predicated region fallthrough
CT: control target
= control target key end

     0   :  { %vm195_vm0 = vcmask 1046528   ;;  %vm146_vm1 = vcmask 56320   ;;  %v966_v4 = vmov 0   ;;  %s1232_s0 = inlined_call_operand.vmem [shape: f32[7,128], index: 0, kind: input, shape index: {}]   ;;  %s1233_s1 = inlined_call_operand.vmem [shape: f32[128,7], index: 1, kind: input, shape index: {}]   ;;  %s1234_s2 = inlined_call_operand.vmem [shape: f32[128,1], index: 2, kind: input, shape index: {}]   ;;  %s1235_s3 = inlined_call_operand.vmem [shape: f32[64,128], index: 3, kind: input, shape index: {}]   ;;  %s1236_s4 = inlined_call_operand.vmem [shape: f32[64,1], index: 4, kind: input, shape index: {}]   ;;  %s1237_s5 = inlined_call_operand.vmem [shape: f32[32,64], index: 5, kind: input, shape index: {}]   ;;  %s1238_s6 = inlined_call_operand.vmem [shape: f32[32,1], index: 6, kind: input, shape index: {}]   ;;  %s1239_s7 = inlined_call_operand.vmem [shape: f32[4,32], index: 7, kind: input, shape index: {}]   ;;  %s1240_s8 = inlined_call_operand.vmem [shape: f32[4,1], index: 8, kind: input, shape index: {}]   ;;  %s1241_s9 = inlined_call_operand.hbm [shape: f32[4,128], index: 9, kind: output, shape index: {}]  }
   0x1   :  { %v33_v0 = vld [vmem:[%s1232_s0] sm:$0x7f]  ;;  %v35_v2 = vld [vmem:[%s1233_s1 + $0x8] sm:$0xff]  ;;  %v36_v3 = vld [vmem:[%s1233_s1 + $0x10] sm:$0xff]  ;;  %942 = vset.pattern.permute.xlu0 %v966_v4  ;;  %943 = vset.pattern.permute.xlu1 %v966_v4 }
   0x2   :  { %v34_v1 = vld [vmem:[%s1233_s1] sm:$0xff]  ;;  %835 = vmatprep.subr.msk.mxu0 %vm195_vm0, %v33_v0  ;;  %v37_v5 = vld [vmem:[%s1233_s1 + $0x18] sm:$0xff]  ;;  %v63_v8 = vld [vmem:[%s1234_s2 + $0x68] sm:$0xff] }
   0x3   :  { %837 = vmatprep.mubr.msk.f32.mxu0 %vm146_vm1, %v34_v1  ;;  %836 = vmatpush3.msk.msra.mxu0 %vm195_vm0, %v33_v0  ;;  %v38_v6 = vld [vmem:[%s1233_s1 + $0x20] sm:$0xff]  ;;  %v65_v7 = vld [vmem:[%s1234_s2 + $0x78] sm:$0xff]  ;;  %v64_v9 = vld [vmem:[%s1234_s2 + $0x70] sm:$0xff] }
   0x4   :  { %838 = vmatmul.mubr.msk.f32.vlgmr.msra.gmra.mxu0 %vm146_vm1, %v35_v2  ;;  %143 = vperm.xlu0 %942, %v65_v7   ;;  %v39_v10 = vld [vmem:[%s1233_s1 + $0x28] sm:$0xff]  ;;  %v62_v11 = vld [vmem:[%s1234_s2 + $0x60] sm:$0xff]  ;;  %v40_v12 = vld [vmem:[%s1233_s1 + $0x30] sm:$0xff] }
   0x5   :  { %840 = vmatprep.mubr.msk.f32.mxu0 %vm146_vm1, %v36_v3  ;;  %133 = vperm.xlu1 %943, %v63_v8   ;;  %v61_v13 = vld [vmem:[%s1234_s2 + $0x58] sm:$0xff]  ;;  %v60_v15 = vld [vmem:[%s1234_s2 + $0x50] sm:$0xff]  ;;  %v42_v16 = vld [vmem:[%s1233_s1 + $0x40] sm:$0xff] }
   0x6   :  { %v41_v14 = vld [vmem:[%s1233_s1 + $0x38] sm:$0xff]  ;;  %v59_v17 = vld [vmem:[%s1234_s2 + $0x48] sm:$0xff] }
   0x8   :  { %841 = vmatmul.mubr.msk.f32.gmra.mxu0 %vm146_vm1, %v37_v5  ;;  %138 = vperm.xlu0 %942, %v64_v9  }
   0x9   :  { %843 = vmatprep.mubr.msk.f32.mxu0 %vm146_vm1, %v38_v6  ;;  %128 = vperm.xlu1 %943, %v62_v11  }
   0xc   :  { %844 = vmatmul.mubr.msk.f32.gmra.mxu0 %vm146_vm1, %v39_v10  ;;  %123 = vperm.xlu0 %942, %v61_v13  }
   0xd   :  { %846 = vmatprep.mubr.msk.f32.mxu0 %vm146_vm1, %v40_v12  ;;  %118 = vperm.xlu1 %943, %v60_v15  }
  0x10   :  { %847 = vmatmul.mubr.msk.f32.gmra.mxu0 %vm146_vm1, %v41_v14 }
  0x11   :  { %14 = vsyncpa [#allocation3], 0  ;;  %849 = vmatprep.mubr.msk.f32.mxu0 %vm146_vm1, %v42_v16  ;;  %v43_v18 = vld [vmem:[%s1233_s1 + $0x48] sm:$0xff]  ;;  %v58_v19 = vld [vmem:[%s1234_s2 + $0x40] sm:$0xff]  ;;  %113 = vperm.xlu0 %942, %v59_v17   ;;  %vm557_vm2 = vcmask 523264   ;;  %vm968_vm3 = vmmov 0  }
  0x12   :  { %v44_v20 = vld [vmem:[%s1233_s1 + $0x50] sm:$0xff]  ;;  %108 = vperm.xlu1 %943, %v58_v19   ;;  %v57_v21 = vld [vmem:[%s1234_s2 + $0x38] sm:$0xff]  ;;  %v46_v24 = vld [vmem:[%s1233_s1 + $0x60] sm:$0xff]  ;;  %vm666_vm4 = vcmask 261120   ;;  %s969_s29 = smov [#allocation2]  }
  0x13   :  { %v45_v22 = vld [vmem:[%s1233_s1 + $0x58] sm:$0xff]  ;;  %v56_v23 = vld [vmem:[%s1234_s2 + $0x30] sm:$0xff]  ;;  %v55_v25 = vld [vmem:[%s1234_s2 + $0x28] sm:$0xff] }
  0x14   :  { %850 = vmatmul.mubr.msk.f32.gmra.mxu0 %vm146_vm1, %v43_v18  ;;  %v47_v26 = vld [vmem:[%s1233_s1 + $0x68] sm:$0xff]  ;;  %v54_v27 = vld [vmem:[%s1234_s2 + $0x20] sm:$0xff]  ;;  %v48_v28 = vld [vmem:[%s1233_s1 + $0x70] sm:$0xff] }
  0x15   :  { %852 = vmatprep.mubr.msk.f32.mxu0 %vm146_vm1, %v44_v20  ;;  %103 = vperm.xlu0 %942, %v57_v21   ;;  %v53_v29 = vld [vmem:[%s1234_s2 + $0x18] sm:$0xff]  ;;  %v52_v31 = vld [vmem:[%s1234_s2 + $0x10] sm:$0xff]  ;;  %v51_v32 = vld [vmem:[%s1234_s2 + $0x8] sm:$0xff] }
  0x16   :  { %98 = vperm.xlu1 %943, %v56_v23   ;;  %v49_v30 = vld [vmem:[%s1233_s1 + $0x78] sm:$0xff]  ;;  %v50_v33 = vld [vmem:[%s1234_s2] sm:$0xff]  ;;  %v374_v35 = vld [vmem:[%s1236_s4 + $0x30] sm:$0xff] }
  0x17   :  { %v375_v34 = vld [vmem:[%s1236_s4 + $0x38] sm:$0xff]  ;;  %v373_v36 = vld [vmem:[%s1236_s4 + $0x28] sm:$0xff]  ;;  %v372_v37 = vld [vmem:[%s1236_s4 + $0x20] sm:$0xff] }
  0x18   :  { %853 = vmatmul.mubr.msk.f32.gmra.mxu0 %vm146_vm1, %v45_v22  ;;  %v371_v38 = vld [vmem:[%s1236_s4 + $0x18] sm:$0xff]  ;;  %v370_v39 = vld [vmem:[%s1236_s4 + $0x10] sm:$0xff]  ;;  %v369_v40 = vld [vmem:[%s1236_s4 + $0x8] sm:$0xff] }
  0x19   :  { %855 = vmatprep.mubr.msk.f32.mxu0 %vm146_vm1, %v46_v24  ;;  %93 = vperm.xlu0 %942, %v55_v25   ;;  %v368_v41 = vld [vmem:[%s1236_s4] sm:$0xff]  ;;  %v536_v42 = vld [vmem:[%s1238_s6 + $0x18] sm:$0xff]  ;;  %v535_v43 = vld [vmem:[%s1238_s6 + $0x10] sm:$0xff]  ;;  %s747_s4 = sshll.u32 %s969_s29, 4  ;;  %s748_s4 = int_to_ptr.vmem [resolvable:$true] %s747_s4 }
  0x1a   :  { %88 = vperm.xlu1 %943, %v54_v27   ;;  %v534_v44 = vld [vmem:[%s1238_s6 + $0x8] sm:$0xff]  ;;  %v533_v45 = vld [vmem:[%s1238_s6] sm:$0xff]  ;;  %s944_s30 = scalar_lea.vmem %s748_s4, 64  ;;  %p949_p1 = scmp.lt.s32.totalorder %s748_s4, %s748_s4 }
  0x1b   :  { %v660_v46 = vld [vmem:[%s1240_s8] sm:$0xf]  ;;  %p945_p0 = scmp.ne.s32.totalorder %s748_s4, %s944_s30  ;;  %p950_p2 = scmp.lt.s32.totalorder %s944_s30, %s944_s30 }
  0x1c   :  { %856 = vmatmul.mubr.msk.f32.gmra.mxu0 %vm146_vm1, %v47_v26  ;;  %v360_v47 = vld [vmem:[%s1235_s3] sm:$0xff] }
  0x1d   :  { %858 = vmatprep.mubr.msk.f32.mxu0 %vm146_vm1, %v48_v28  ;;  %83 = vperm.xlu0 %942, %v53_v29   ;;  %p951_p3 = por %p950_p2, %p949_p1 }
  0x1e   :  { %78 = vperm.xlu1 %943, %v52_v31   ;;  %893 = vmatprep.mubr.f32.mxu1 %v360_v47 }
  0x1f   :  { %p952_p4 = pnand %p951_p3, %p945_p0 }
  0x20   :  { %859 = vmatmul.mubr.msk.f32.gmra.mxu0 %vm146_vm1, %v49_v30 }
  0x21   :  { %73 = vperm.xlu0 %942, %v51_v32  }
  0x22   :  { %68 = vperm.xlu1 %943, %v50_v33  }
  0x25   :  { %413 = vperm.xlu0 %942, %v375_v34  }
  0x26   :  { %408 = vperm.xlu1 %943, %v374_v35  }
  0x29   :  { %403 = vperm.xlu0 %942, %v373_v36  }
  0x2a   :  { %398 = vperm.xlu1 %943, %v372_v37  }
  0x2d   :  { %393 = vperm.xlu0 %942, %v371_v38  }
  0x2e   :  { %388 = vperm.xlu1 %943, %v370_v39  }
  0x31   :  { %383 = vperm.xlu0 %942, %v369_v40  }
  0x32   :  { %378 = vperm.xlu1 %943, %v368_v41  }
  0x35   :  { %554 = vperm.xlu0 %942, %v536_v42  }
  0x36   :  { %549 = vperm.xlu1 %943, %v535_v43  }
  0x39   :  { %544 = vperm.xlu0 %942, %v534_v44  }
  0x3a   :  { %539 = vperm.xlu1 %943, %v533_v45  }
  0x3d   :  { %663 = vperm.xlu0 %942, %v660_v46  }
  0x7f   :  { %v144_v54 = vpop.permute.xlu0 %143 }
  0x80   :  { %v134_v55 = vpop.permute.xlu1 %133 }
  0x83   :  { %v139_v59 = vpop.permute.xlu0 %138 }
  0x84   :  { %v129_v60 = vpop.permute.xlu1 %128 }
  0x87   :  { %v124_v0 = vpop.permute.xlu0 %123 }
  0x88   :  { %v119_v1 = vpop.permute.xlu1 %118 }
  0x8c   :  { %v114_v5 = vpop.permute.xlu0 %113 }
  0x8d   :  { %v109_v7 = vpop.permute.xlu1 %108 }
  0x90   :  { %v104_v16 = vpop.permute.xlu0 %103 }
  0x91   :  { %v99_v17 = vpop.permute.xlu1 %98 }
  0x94   :  { %v94_v24 = vpop.permute.xlu0 %93 }
  0x95   :  { %v89_v25 = vpop.permute.xlu1 %88 }
  0x98   :  { %v84_v32 = vpop.permute.xlu0 %83 }
  0x99   :  { %v79_v33 = vpop.permute.xlu1 %78 }
  0x9c   :  { %v74_v40 = vpop.permute.xlu0 %73 }
  0x9d   :  { %v69_v41 = vpop.permute.xlu1 %68 }
  0xc4   :  { %v1177_v48 = vpop.f32.mrf.mxu0 }
  0xc5   :  { %v271_v42 = vadd.f32 %v1177_v48, %v74_v40  ;;  %v362_v48 = vld [vmem:[%s1235_s3 + $0x10] sm:$0xff] }
  0xc6   :  { %v1179_v49 = vpop.f32.mrf.mxu0 }
  0xc7   :  { %v266_v44 = vadd.f32 %v1179_v49, %v69_v41  ;;  %v345_v46 = vmax.f32 %v271_v42, 0.0  ;;  %v363_v49 = vld [vmem:[%s1235_s3 + $0x18] sm:$0xff] }
  0xc8   :  { %v1181_v50 = vpop.f32.mrf.mxu0 }
  0xc9   :  { %v281_v36 = vadd.f32 %v1181_v50, %v84_v32  ;;  %v344_v47 = vmax.f32 %v266_v44, 0.0  ;;  %v361_v50 = vld [vmem:[%s1235_s3 + $0x8] sm:$0xff]  ;;  %v659_v44 = vld [vmem:[%s1239_s7] sm:$0xf] }
  0xca   :  { %v1183_v51 = vpop.f32.mrf.mxu0 }
  0xcb   :  { %v276_v38 = vadd.f32 %v1183_v51, %v79_v33  ;;  %v347_v43 = vmax.f32 %v281_v36, 0.0  ;;  %v364_v51 = vld [vmem:[%s1235_s3 + $0x20] sm:$0xff] }
  0xcc   :  { %v845_v52 = vpop.f32.mrf.mxu0 }
  0xcd   :  { %v291_v30 = vadd.f32 %v845_v52, %v94_v24  ;;  %v346_v45 = vmax.f32 %v276_v38, 0.0  ;;  %v365_v52 = vld [vmem:[%s1235_s3 + $0x28] sm:$0xff] }
  0xce   :  { %v285_v53 = vpop.f32.mrf.mxu0  ;;  %v530_v24 = vld [vmem:[%s1237_s5 + $0x8] sm:$0xff] }
  0xcf   :  { %v286_v34 = vadd.f32 %v285_v53, %v89_v25  ;;  %v349_v37 = vmax.f32 %v291_v30, 0.0  ;;  %v366_v53 = vld [vmem:[%s1235_s3 + $0x30] sm:$0xff] }
  0xd0   :  { %v848_v56 = vpop.f32.mrf.mxu0  ;;  %v531_v25 = vld [vmem:[%s1237_s5 + $0x10] sm:$0xff] }
  0xd1   :  { %v301_v26 = vadd.f32 %v848_v56, %v104_v16  ;;  %v348_v39 = vmax.f32 %v286_v34, 0.0 }
  0xd2   :  { %v295_v57 = vpop.f32.mrf.mxu0 }
  0xd3   :  { %v296_v28 = vadd.f32 %v295_v57, %v99_v17  ;;  %v351_v31 = vmax.f32 %v301_v26, 0.0  ;;  %v532_v26 = vld [vmem:[%s1237_s5 + $0x18] sm:$0xff] }
  0xd4   :  { %v851_v58 = vpop.f32.mrf.mxu0 }
  0xd5   :  { %v311_v20 = vadd.f32 %v851_v58, %v114_v5  ;;  %v350_v35 = vmax.f32 %v296_v28, 0.0  ;;  %v414_v58 = vpop.permute.xlu0 %413 }
  0xd6   :  { %v305_v61 = vpop.f32.mrf.mxu0 }
  0xd7   :  { %v306_v22 = vadd.f32 %v305_v61, %v109_v7  ;;  %v353_v27 = vmax.f32 %v311_v20, 0.0 }
  0xd8   :  { %v854_v62 = vpop.f32.mrf.mxu0 }
  0xd9   :  { %v321_v14 = vadd.f32 %v854_v62, %v124_v0  ;;  %v352_v29 = vmax.f32 %v306_v22, 0.0 }
  0xda   :  { %v315_v63 = vpop.f32.mrf.mxu0 }
  0xdb   :  { %v316_v18 = vadd.f32 %v315_v63, %v119_v1  ;;  %v355_v21 = vmax.f32 %v321_v14, 0.0  ;;  %v404_v63 = vpop.permute.xlu0 %403 }
  0xdc   :  { %v857_v2 = vpop.f32.mrf.mxu0 }
  0xdd   :  { %v331_v9 = vadd.f32 %v857_v2, %v134_v55  ;;  %v354_v23 = vmax.f32 %v316_v18, 0.0  ;;  %v529_v55 = vld [vmem:[%s1237_s5] sm:$0xff] }
  0xde   :  { %v325_v3 = vpop.f32.mrf.mxu0  ;;  %921 = vmatprep.mubr.msk.f32.mxu0 %vm557_vm2, %v529_v55 }
  0xdf   :  { %v326_v12 = vadd.f32 %v325_v3, %v129_v60  ;;  %v357_v15 = vmax.f32 %v331_v9, 0.0  ;;  %v409_v60 = vpop.permute.xlu1 %408 }
  0xe0   :  { %v860_v4 = vpop.f32.mrf.mxu0 }
  0xe1   :  { %v341_v6 = vadd.f32 %v860_v4, %v144_v54  ;;  %v356_v19 = vmax.f32 %v326_v12, 0.0  ;;  %v367_v54 = vld [vmem:[%s1235_s3 + $0x38] sm:$0xff] }
  0xe2   :  { %v335_v8 = vpop.f32.mrf.mxu0 }
  0xe3   :  { %v359_v10 = vmax.f32 %v341_v6, 0.0  ;;  %v336_v11 = vadd.f32 %v335_v8, %v139_v59  ;;  %v399_v1 = vpop.permute.xlu1 %398  ;;  %v394_v8 = vpop.permute.xlu0 %393 }
  0xe5   :  { %v358_v13 = vmax.f32 %v336_v11, 0.0  ;;  %861 = vmatprep.subr.mxu1 %v359_v10 }
  0xe6   :  { %862 = vmatpush3.msra.mxu1 %v359_v10 }
  0xe7   :  { %863 = vmatprep.subr.mxu1 %v358_v13  ;;  %v389_v11 = vpop.permute.xlu1 %388  ;;  %v384_v16 = vpop.permute.xlu0 %383 }
  0xe8   :  { %864 = vmatpush3.msra.mxu1 %v358_v13 }
  0xe9   :  { %865 = vmatprep.subr.mxu1 %v357_v15 }
  0xea   :  { %866 = vmatpush3.msra.mxu1 %v357_v15 }
  0xeb   :  { %867 = vmatprep.subr.mxu1 %v356_v19  ;;  %v555_v28 = vpop.permute.xlu0 %554 }
  0xec   :  { %868 = vmatpush3.msra.mxu1 %v356_v19  ;;  %v379_v19 = vpop.permute.xlu1 %378 }
  0xed   :  { %869 = vmatprep.subr.mxu1 %v355_v21 }
  0xee   :  { %870 = vmatpush3.msra.mxu1 %v355_v21 }
  0xef   :  { %871 = vmatprep.subr.mxu1 %v354_v23  ;;  %v545_v34 = vpop.permute.xlu0 %544 }
  0xf0   :  { %872 = vmatpush3.msra.mxu1 %v354_v23  ;;  %v550_v30 = vpop.permute.xlu1 %549 }
  0xf1   :  { %873 = vmatprep.subr.mxu1 %v353_v27 }
  0xf2   :  { %874 = vmatpush3.msra.mxu1 %v353_v27  ;;  %v967_v27 = vmov 0.0  }
  0xf3   :  { %875 = vmatprep.subr.mxu1 %v352_v29 }
  0xf4   :  { %876 = vmatpush3.msra.mxu1 %v352_v29 }
  0xf5   :  { %877 = vmatprep.subr.mxu1 %v351_v31 }
  0xf6   :  { %878 = vmatpush3.msra.mxu1 %v351_v31 }
  0xf7   :  { %879 = vmatprep.subr.mxu1 %v350_v35 }
  0xf8   :  { %880 = vmatpush3.msra.mxu1 %v350_v35 }
  0xf9   :  { %881 = vmatprep.subr.mxu1 %v349_v37 }
  0xfa   :  { %882 = vmatpush3.msra.mxu1 %v349_v37 }
  0xfb   :  { %883 = vmatprep.subr.mxu1 %v348_v39 }
  0xfc   :  { %884 = vmatpush3.msra.mxu1 %v348_v39  ;;  %v540_v39 = vpop.permute.xlu1 %539 }
  0xfd   :  { %885 = vmatprep.subr.mxu1 %v347_v43 }
  0xfe   :  { %886 = vmatpush3.msra.mxu1 %v347_v43 }
  0xff   :  { %887 = vmatprep.subr.mxu1 %v346_v45 }
 0x100   :  { %888 = vmatpush3.msra.mxu1 %v346_v45  ;;  %v664_v45 = vpop.permute.xlu0 %663 }
 0x101   :  { %889 = vmatprep.subr.mxu1 %v345_v46 }
 0x102   :  { %890 = vmatpush3.msra.mxu1 %v345_v46 }
 0x103   :  { %891 = vmatprep.subr.mxu1 %v344_v47 }
 0x104   :  { %892 = vmatpush3.msra.mxu1 %v344_v47 }
 0x105   :  { %894 = vmatmul.mubr.f32.vlgmr.msra.gmra.mxu1 %v361_v50 }
 0x106   :  { %896 = vmatprep.mubr.f32.mxu1 %v362_v48 }
 0x109   :  { %897 = vmatmul.mubr.f32.gmra.mxu1 %v363_v49 }
 0x10a   :  { %899 = vmatprep.mubr.f32.mxu1 %v364_v51 }
 0x10d   :  { %900 = vmatmul.mubr.f32.gmra.mxu1 %v365_v52 }
 0x10e   :  { %902 = vmatprep.mubr.f32.mxu1 %v366_v53 }
 0x111   :  { %903 = vmatmul.mubr.f32.gmra.mxu1 %v367_v54 }
 0x1c5   :  { %v895_v56 = vpop.f32.mrf.mxu1 }
 0x1c6   :  { %v488_v17 = vadd.f32 %v895_v56, %v384_v16 }
 0x1c7   :  { %v482_v57 = vpop.f32.mrf.mxu1 }
 0x1c8   :  { %v483_v20 = vadd.f32 %v482_v57, %v379_v19  ;;  %v522_v22 = vmax.f32 %v488_v17, 0.0 }
 0x1c9   :  { %v898_v59 = vpop.f32.mrf.mxu1 }
 0x1ca   :  { %v498_v12 = vadd.f32 %v898_v59, %v394_v8  ;;  %v521_v23 = vmax.f32 %v483_v20, 0.0 }
 0x1cb   :  { %v492_v61 = vpop.f32.mrf.mxu1 }
 0x1cc   :  { %v493_v14 = vadd.f32 %v492_v61, %v389_v11  ;;  %v524_v18 = vmax.f32 %v498_v12, 0.0 }
 0x1cd   :  { %v901_v62 = vpop.f32.mrf.mxu1 }
 0x1ce   :  { %v508_v5 = vadd.f32 %v901_v62, %v404_v63  ;;  %v523_v21 = vmax.f32 %v493_v14, 0.0 }
 0x1cf   :  { %v502_v0 = vpop.f32.mrf.mxu1 }
 0x1d0   :  { %v503_v9 = vadd.f32 %v502_v0, %v399_v1  ;;  %v526_v13 = vmax.f32 %v508_v5, 0.0 }
 0x1d1   :  { %v904_v2 = vpop.f32.mrf.mxu1 }
 0x1d2   :  { %v518_v3 = vadd.f32 %v904_v2, %v414_v58  ;;  %v525_v15 = vmax.f32 %v503_v9, 0.0 }
 0x1d3   :  { %v512_v4 = vpop.f32.mrf.mxu1 }
 0x1d4   :  { %v528_v6 = vmax.f32 %v518_v3, 0.0  ;;  %v513_v7 = vadd.f32 %v512_v4, %v409_v60 }
 0x1d6   :  { %v527_v10 = vmax.f32 %v513_v7, 0.0  ;;  %905 = vmatprep.subr.mxu0 %v528_v6 }
 0x1d7   :  { %906 = vmatpush3.msra.mxu0 %v528_v6 }
 0x1d8   :  { %907 = vmatprep.subr.mxu0 %v527_v10 }
 0x1d9   :  { %908 = vmatpush3.msra.mxu0 %v527_v10 }
 0x1da   :  { %909 = vmatprep.subr.mxu0 %v526_v13 }
 0x1db   :  { %910 = vmatpush3.msra.mxu0 %v526_v13 }
 0x1dc   :  { %911 = vmatprep.subr.mxu0 %v525_v15 }
 0x1dd   :  { %912 = vmatpush3.msra.mxu0 %v525_v15 }
 0x1de   :  { %913 = vmatprep.subr.mxu0 %v524_v18 }
 0x1df   :  { %914 = vmatpush3.msra.mxu0 %v524_v18 }
 0x1e0   :  { %915 = vmatprep.subr.mxu0 %v523_v21 }
 0x1e1   :  { %916 = vmatpush3.msra.mxu0 %v523_v21 }
 0x1e2   :  { %917 = vmatprep.subr.mxu0 %v522_v22 }
 0x1e3   :  { %918 = vmatpush3.msra.mxu0 %v522_v22 }
 0x1e4   :  { %919 = vmatprep.subr.mxu0 %v521_v23 }
 0x1e5   :  { %920 = vmatpush3.msra.mxu0 %v521_v23 }
 0x1e6   :  { %922 = vmatmul.mubr.msk.f32.vlgmr.msra.gmra.mxu0 %vm557_vm2, %v530_v24  ;;  %927 = vmatprep.subr.mxu0 %v967_v27 }
 0x1e7   :  { %924 = vmatprep.mubr.msk.f32.mxu0 %vm557_vm2, %v531_v25 }
 0x1ea   :  { %925 = vmatmul.mubr.msk.f32.gmra.mxu0 %vm557_vm2, %v532_v26 }
 0x1eb   :  { %935 = vmatprep.mubr.msk.f32.mxu0 %vm968_vm3, %v967_v27 }
 0x2a6   :  { %v923_v29 = vpop.f32.mrf.mxu0 }
 0x2a7   :  { %v642_v36 = vadd.f32 %v923_v29, %v545_v34 }
 0x2a8   :  { %v636_v31 = vpop.f32.mrf.mxu0 }
 0x2a9   :  { %v637_v40 = vadd.f32 %v636_v31, %v540_v39  ;;  %v656_v42 = vmax.f32 %v642_v36, 0.0 }
 0x2aa   :  { %v926_v32 = vpop.f32.mrf.mxu0 }
 0x2ab   :  { %v652_v33 = vadd.f32 %v926_v32, %v555_v28  ;;  %v655_v43 = vmax.f32 %v637_v40, 0.0 }
 0x2ac   :  { %v646_v35 = vpop.f32.mrf.mxu0 }
 0x2ad   :  { %v658_v37 = vmax.f32 %v652_v33, 0.0  ;;  %v647_v38 = vadd.f32 %v646_v35, %v550_v30 }
 0x2af   :  { %v657_v41 = vmax.f32 %v647_v38, 0.0  ;;  %928 = vmatpush3.msra.mxu0 %v658_v37 }
 0x2b0   :  { %929 = vmatprep.subr.mxu0 %v967_v27 }
 0x2b1   :  { %930 = vmatpush3.msra.mxu0 %v657_v41 }
 0x2b2   :  { %931 = vmatprep.subr.mxu0 %v967_v27 }
 0x2b3   :  { %932 = vmatpush3.msra.mxu0 %v656_v42 }
 0x2b4   :  { %933 = vmatprep.subr.mxu0 %v967_v27 }
 0x2b5   :  { %934 = vmatpush3.msra.mxu0 %v655_v43 }
 0x2b6   :  { %936 = vmatmul.mubr.msk.f32.vlgmr.msra.gmra.mxu0 %vm666_vm4, %v659_v44 }
 0x376   :  { %v736_v46 = vpop.f32.mrf.mxu0 }
 0x377   :  { %v737_v47 = vadd.f32 %v736_v46, %v664_v45 }
 0x378   :  { %v937_v50 = vpop.f32.mrf.mxu0 }
 0x379   :  { %740 = vst [vmem:[#allocation2] sm:$0xf] %v737_v47 }
 0x37a   :  { %955 = shalt.err (!%p952_p4)
}
 0x37b   :  { %750 = dma.vmem_to_hbm [thread:$0]  %s748_s4, 64, %s1241_s9, [#allocation3]  }
 0x37c   :  { %964 = dma.done.wait [#allocation3], 64  }
 0x37d   :  { %965 = vsyncadd [#allocation3], 4294967232 }
 0x37e   :  { %754 = vsyncpa [#allocation3], 1 }

</bundles_post_ra>
